<compile_context>
chip_gen: v6e
topology: v6e:2x2x1
jax: 0.10.0
libtpu: 0.0.40
codegen_flags: <defaults>
</compile_context>

<pallas_src>
import functools

import jax
import jax.numpy as jnp
from jax.experimental import pallas as pl
from jax.experimental.pallas import tpu as pltpu

_MAX_SLAB_W = 512                    # widest slab: 4x128 lanes -> wide unmasked vst
_ROW_ALIGN = 16                      # covers f32 (8-row) and bf16 (16-row) sublane tiling
_TARGET_BLOCK_BYTES = 2 * 1024 * 1024  # ~2 MiB per stream per block


# ------------------------------- kernels ----------------------------------- #

def _quant_kernel_static(x_ref, o_ref, *, scale, r_off):
    # out = (round(x * scale) [+ r_off]) / scale     (scale, r_off trace-time consts)
    x = x_ref[...].astype(jnp.float32)
    q = jnp.round(x * scale)
    if r_off is not None:
        q = q + r_off
    o_ref[...] = (q / scale).astype(o_ref.dtype)


def _quant_offset_kernel_static(x_ref, off_ref, o_ref, *, scale):
    # out = (round(x * scale) + round(offset)) / scale
    x = x_ref[...].astype(jnp.float32)
    off = off_ref[...].astype(jnp.float32)
    o_ref[...] = ((jnp.round(x * scale) + jnp.round(off)) / scale).astype(o_ref.dtype)


def _quant_kernel_dyn(params_ref, x_ref, o_ref, *, add_scalar_off):
    # params (SMEM, f32[2]) = [scale, rounded scalar offset]
    s = params_ref[0]
    x = x_ref[...].astype(jnp.float32)
    q = jnp.round(x * s)
    if add_scalar_off:
        q = q + params_ref[1]
    o_ref[...] = (q / s).astype(o_ref.dtype)


def _quant_offset_kernel_dyn(params_ref, x_ref, off_ref, o_ref):
    s = params_ref[0]
    x = x_ref[...].astype(jnp.float32)
    off = off_ref[...].astype(jnp.float32)
    o_ref[...] = ((jnp.round(x * s) + jnp.round(off)) / s).astype(o_ref.dtype)


# ----------------------------- slab plumbing -------------------------------- #

def _choose_block_rows(rows, width, itemsize):
    """Block rows: ~2 MiB/stream, multiple of 16, >= ~4 grid steps when possible."""
    if rows <= 2 * _ROW_ALIGN:
        return rows  # tiny tensor: single block (block dims == array dims is allowed)
    bytes_per_row = width * itemsize
    cap = max(_ROW_ALIGN, (_TARGET_BLOCK_BYTES // bytes_per_row) // _ROW_ALIGN * _ROW_ALIGN)
    quarter = max(_ROW_ALIGN, (rows // 4) // _ROW_ALIGN * _ROW_ALIGN)
    return int(min(cap, quarter))


def _slab_geometry(n, itemsize):
    """Static geometry for a flat vector of length n -> (width, rows, padded, block_rows)."""
    width = None
    for w in (512, 384, 256, 128):      # widest lane-multiple that divides n exactly
        if n % w == 0:
            width = w
            break
    if width is None:
        width = _MAX_SLAB_W             # misaligned size: one pad/slice pass (unavoidable)
        rows = -(-n // width)
        padded = rows * width
    else:
        rows = n // width               # exact reshape: no pad, no slice
        padded = n
    block_rows = _choose_block_rows(rows, width, itemsize)
    return width, rows, padded, block_rows


def _prep(arr, rows, width, padded):
    flat = arr.reshape(-1)
    if padded != flat.shape[0]:
        flat = jnp.pad(flat, (0, padded - flat.shape[0]))
    return flat.reshape(rows, width)


def _unprep(out2d, n, orig_shape):
    flat = out2d.reshape(-1)
    if flat.shape[0] != n:
        flat = flat[:n]
    return flat.reshape(orig_shape)


def _compiler_params():
    # Conservative VMEM budget (safe on v5e/v6e/v7x); the single grid axis is
    # "parallel" so v7x shards it across its 2 TensorCores.
    return pltpu.CompilerParams(
        dimension_semantics=("parallel",),
        vmem_limit_bytes=32 * 1024 * 1024,
    )


# --------------------------- jitted wrappers -------------------------------- #

@functools.partial(jax.jit, static_argnames=("scale", "r_off"))
def _quantize_const(inp, offset, *, scale, r_off):
    """scale / rounded scalar offset baked in as trace-time constants."""
    orig_shape, dtype, n = inp.shape, inp.dtype, inp.size
    width, rows, padded, block_rows = _slab_geometry(n, dtype.itemsize)
    x2d = _prep(inp, rows, width, padded)
    block = (block_rows, width)
    idx = lambda i: (i, 0)
    grid = (pl.cdiv(rows, block_rows),)
    out_shape = jax.ShapeDtypeStruct((rows, width), dtype)

    if offset is None:
        out2d = pl.pallas_call(
            functools.partial(_quant_kernel_static, scale=scale, r_off=r_off),
            out_shape=out_shape,
            grid=grid,
            in_specs=[pl.BlockSpec(block, idx)],
            out_specs=pl.BlockSpec(block, idx),
            compiler_params=_compiler_params(),
        )(x2d)
    else:
        off2d = _prep(offset, rows, width, padded)
        out2d = pl.pallas_call(
            functools.partial(_quant_offset_kernel_static, scale=scale),
            out_shape=out_shape,
            grid=grid,
            in_specs=[pl.BlockSpec(block, idx), pl.BlockSpec(block, idx)],
            out_specs=pl.BlockSpec(block, idx),
            compiler_params=_compiler_params(),
        )(x2d, off2d)
    return _unprep(out2d, n, orig_shape)


@functools.partial(jax.jit, static_argnames=("add_scalar_off",))
def _quantize_dyn(inp, offset, params, *, add_scalar_off):
    """Runtime scale / scalar offset: params = f32[2] lives in SMEM (no HBM stream)."""
    orig_shape, dtype, n = inp.shape, inp.dtype, inp.size
    width, rows, padded, block_rows = _slab_geometry(n, dtype.itemsize)
    x2d = _prep(inp, rows, width, padded)
    block = (block_rows, width)
    idx = lambda i: (i, 0)
    grid = (pl.cdiv(rows, block_rows),)
    out_shape = jax.ShapeDtypeStruct((rows, width), dtype)
    params = params.astype(jnp.float32)
    smem_spec = pl.BlockSpec(memory_space=pltpu.MemorySpace.SMEM)

    if offset is None:
        out2d = pl.pallas_call(
            functools.partial(_quant_kernel_dyn, add_scalar_off=add_scalar_off),
            out_shape=out_shape,
            grid=grid,
            in_specs=[smem_spec, pl.BlockSpec(block, idx)],
            out_specs=pl.BlockSpec(block, idx),
            compiler_params=_compiler_params(),
        )(params, x2d)
    else:
        off2d = _prep(offset, rows, width, padded)
        out2d = pl.pallas_call(
            _quant_offset_kernel_dyn,
            out_shape=out_shape,
            grid=grid,
            in_specs=[smem_spec, pl.BlockSpec(block, idx), pl.BlockSpec(block, idx)],
            out_specs=pl.BlockSpec(block, idx),
            compiler_params=_compiler_params(),
        )(params, x2d, off2d)
    return _unprep(out2d, n, orig_shape)


# -------------------------------- module ------------------------------------ #

class Quantizer:
    """JAX/Pallas port of DualQuanv Quantizer (forward only; the STE backward of
    the original module is left to JAX autodiff conventions outside the kernel)."""

    def __call__(self, inp, nbit, alpha=None, offset=None):
        base = 2 ** nbit - 1
        alpha_static = alpha is None or isinstance(alpha, (int, float))

        if alpha_static:
            scale = float(base) if alpha is None else float(base) / float(alpha)
            self.scale = scale

            if offset is None:
                return _quantize_const(inp, None, scale=scale, r_off=None)

            if isinstance(offset, (int, float)):
                r_off = float(jnp.round(jnp.float32(offset)))
                return _quantize_const(inp, None, scale=scale, r_off=r_off)

            offset = jnp.asarray(offset)
            if offset.size == 1:
                # runtime scalar offset -> SMEM params (no extra HBM stream)
                params = jnp.stack([jnp.float32(scale),
                                    jnp.round(offset.astype(jnp.float32).reshape(()))])
                return _quantize_dyn(inp, None, params, add_scalar_off=True)

            if offset.shape != inp.shape:
                # TODO(synk): broadcast per-channel offsets on the VPU in-kernel
                # instead of materializing a full-size HBM copy here.
                offset = jnp.broadcast_to(offset, inp.shape)
            return _quantize_const(inp, offset, scale=scale, r_off=None)

        # runtime (JAX array / traced) alpha
        scale = jnp.asarray(base, jnp.float32) / jnp.asarray(alpha, jnp.float32).reshape(())
        self.scale = scale

        if offset is None:
            params = jnp.stack([scale, jnp.float32(0.0)])
            return _quantize_dyn(inp, None, params, add_scalar_off=False)

        offset = jnp.asarray(offset)
        if offset.size == 1:
            params = jnp.stack([scale,
                                jnp.round(offset.astype(jnp.float32).reshape(()))])
            return _quantize_dyn(inp, None, params, add_scalar_off=True)

        if offset.shape != inp.shape:
            # TODO(synk): same per-channel broadcast note as above.
            offset = jnp.broadcast_to(offset, inp.shape)
        params = jnp.stack([scale, jnp.float32(0.0)])
        return _quantize_dyn(inp, offset, params, add_scalar_off=False)


# --------------------------------- test ------------------------------------- #

if __name__ == "__main__":
    key = jax.random.PRNGKey(0)
    k1, k2, k3 = jax.random.split(key, 3)

    # NCHW input, as the PyTorch module would receive from a conv stack.
    x = jax.random.uniform(k1, (2, 4, 16, 16), dtype=jnp.float32)      # [N, C, H, W]
    offset = jax.random.normal(k2, (2, 4, 16, 16), dtype=jnp.float32) * 0.5
    scalar_offset = 1.7
    nbit = 4
    alpha = 1.5

    q = Quantizer()

    out1 = q(x, nbit)                                       # no alpha, no offset
    out2 = q(x, nbit, alpha=alpha)                          # alpha, no offset
    out3 = q(x, nbit, alpha=alpha, offset=offset)           # alpha + full offset
    out4 = q(x, nbit, alpha=alpha, offset=scalar_offset)    # alpha + scalar offset
    # runtime-array alpha / offset (dynamic SMEM-params path)
    out5 = q(x, nbit, alpha=jnp.float32(alpha), offset=offset)
    out6 = q(x, nbit, alpha=jnp.float32(alpha), offset=jnp.float32(scalar_offset))
    # misaligned size -> exercises the pad/partial-block path
    x_small = jax.random.uniform(k3, (2, 3, 10, 10), dtype=jnp.float32)
    out7 = q(x_small, nbit, alpha=alpha)

    jax.block_until_ready((out1, out2, out3, out4, out5, out6, out7))

    # Reference check against plain-JAX semantics (matches torch.round: half-to-even)
    s1 = float(2 ** nbit - 1)
    ref1 = jnp.round(x * s1) / s1
    s2 = float(2 ** nbit - 1) / alpha
    ref2 = jnp.round(x * s2) / s2
    ref3 = (jnp.round(x * s2) + jnp.round(offset)) / s2
    ref4 = (jnp.round(x * s2) + jnp.round(jnp.float32(scalar_offset))) / s2
    ref7 = jnp.round(x_small * s2) / s2
    assert jnp.allclose(out1, ref1, atol=1e-6)
    assert jnp.allclose(out2, ref2, atol=1e-6)
    assert jnp.allclose(out3, ref3, atol=1e-6)
    assert jnp.allclose(out4, ref4, atol=1e-6)
    assert jnp.allclose(out5, ref3, atol=1e-6)
    assert jnp.allclose(out6, ref4, atol=1e-6)
    assert jnp.allclose(out7, ref7, atol=1e-6)

    print("KERNEL_OK")
</pallas_src>

<mosaic_0001>
module attributes {stable_mosaic.version = 11 : i64} {
  func.func @_quant_kernel_static(%arg0: i32, %arg1: memref<4x512xf32, #tpu.memory_space<vmem>>, %arg2: memref<4x512xf32, #tpu.memory_space<vmem>>) attributes {dimension_semantics = [#tpu.dimension_semantics<parallel>], iteration_bounds = array<i64: 1>, scalar_prefetch = 0 : i64, scratch_operands = 0 : i64, tpu.core_type = #tpu.core_type<tc>, window_params = [{transform_indices = @transform_0, window_bounds = array<i64: 4, 512>}, {transform_indices = @transform_1, window_bounds = array<i64: 4, 512>}]} {
    %c0 = arith.constant 0 : index
    %c0_0 = arith.constant 0 : index
    %0 = vector.load %arg1[%c0, %c0_0] : memref<4x512xf32, #tpu.memory_space<vmem>>, vector<4x512xf32>
    %cst = arith.constant 1.500000e+01 : f32
    %1 = vector.broadcast %cst : f32 to vector<4x512xf32>
    %2 = arith.mulf %0, %1 : vector<4x512xf32>
    %3 = math.roundeven %2 : vector<4x512xf32>
    %cst_1 = arith.constant 1.500000e+01 : f32
    %4 = vector.broadcast %cst_1 : f32 to vector<4x512xf32>
    %5 = arith.divf %3, %4 : vector<4x512xf32>
    %c0_2 = arith.constant 0 : index
    %c0_3 = arith.constant 0 : index
    %6 = vector.load %arg2[%c0_2, %c0_3] : memref<4x512xf32, #tpu.memory_space<vmem>>, vector<4x512xf32>
    tpu.vector_store %arg2[%c0_2, %c0_3], %5 {strides = array<i32>} : memref<4x512xf32, #tpu.memory_space<vmem>>, vector<4x512xf32>,
    return
  }
  func.func @transform_0(%arg0: i32) -> (i32, i32) {
    %c0_i32 = arith.constant 0 : i32
    %c0_i32_0 = arith.constant 0 : i32
    return %arg0, %c0_i32 : i32, i32
  }
  func.func @transform_1(%arg0: i32) -> (i32, i32) {
    %c0_i32 = arith.constant 0 : i32
    %c0_i32_0 = arith.constant 0 : i32
    return %arg0, %c0_i32 : i32, i32
  }
}

</mosaic_0001>

<bundles_post_ra>
// kernel: _quantize_const.1
= control target key start
LH: loop header
LB: loop body
LE: loop exit
PB: predicated region body
PF: predicated region fallthrough
CT: control target
= control target key end

     0   :  { %s61_s0 = inlined_call_operand.vmem [shape: f32[4,512], index: 0, kind: input, shape index: {}]   ;;  %s62_s1 = inlined_call_operand.vmem [shape: f32[4,512], index: 1, kind: output, shape index: {}]  }
   0x1   :  { %v8_v0 = vld [vmem:[%s61_s0] sm:$0xff]  ;;  %v9_v1 = vld [vmem:[%s61_s0 + $0x8] sm:$0xff] }
   0x2   :  { %v10_v2 = vmul.f32 15.0, %v8_v0  ;;  %v11_v3 = vmul.f32 15.0, %v9_v1 }
   0x4   :  { %v25_v4 = vcvt.f32.s32 %v10_v2  ;;  %v23_v5 = vand.u32 2147483647, %v10_v2  ;;  %v33_v6 = vcvt.f32.s32 %v11_v3  ;;  %v28_v8 = vand.u32 2147483648, %v10_v2 }
   0x5   :  { %v31_v9 = vand.u32 2147483647, %v11_v3  ;;  %v36_v11 = vand.u32 2147483648, %v11_v3 }
   0x6   :  { %v26_v7 = vcvt.s32.f32 %v25_v4  ;;  %v34_v10 = vcvt.s32.f32 %v33_v6  ;;  %vm24_vm0 = vcmp.lt.f32.partialorder %v23_v5, 8388608.0 }
   0x7   :  { %vm32_vm1 = vcmp.lt.f32.partialorder %v31_v9, 8388608.0 }
   0x8   :  { %v27_v12 = vand.u32 2147483647, %v26_v7  ;;  %v35_v13 = vand.u32 2147483647, %v34_v10 }
   0xa   :  { %v29_v14 = vor.u32 %v28_v8, %v27_v12  ;;  %v37_v15 = vor.u32 %v36_v11, %v35_v13 }
   0xc   :  { %v30_v16 = vsel %vm24_vm0, %v29_v14, %v10_v2  ;;  %v38_v18 = vsel %vm32_vm1, %v37_v15, %v11_v3 }
   0xd   :  { %v15_v17 = vmul.f32 0.06666667, %v30_v16  ;;  %v16_v19 = vmul.f32 0.06666667, %v38_v18 }
   0xf   :  { %17 = vst [vmem:[%s62_s1] sm:$0xff] %v15_v17  ;;  %18 = vst [vmem:[%s62_s1 + $0x8] sm:$0xff] %v16_v19 }

</bundles_post_ra>
